<compile_context>
chip_gen: v5e
topology: v5e:2x2
jax: 0.10.0
libtpu: 0.0.40
codegen_flags: <defaults>
</compile_context>

<pallas_src>
import functools

import jax
import jax.numpy as jnp
from jax.experimental import pallas as pl
from jax.experimental.pallas import tpu as pltpu

EPS = 1e-5  # nn.LayerNorm default


def _round_up(n, m):
    return ((n + m - 1) // m) * m


def _pad_to(a, shape):
    pads = [(0, t - s) for s, t in zip(a.shape, shape)]
    if any(p[1] for p in pads):
        return jnp.pad(a, pads)
    return a


def feedforward_kernel(x_ref, g_ref, b_ref, w1_ref, b1_ref, w2_ref, b2_ref,
                       o_ref, xln_ref, acc_ref, *, d_actual):
    # Grid = (row tiles i, hidden tiles j).
    # x_ref : (TM, Dp)   g_ref/b_ref/b2_ref : (1, Dp)
    # w1_ref: (Dp, TH)   b1_ref: (1, TH)      w2_ref: (TH, Dp)
    # o_ref : (TM, Dp)
    # xln_ref: (TM, Dp) MXU-dtype cache of LayerNorm(x), persists across j
    # acc_ref: (TM, Dp) f32 accumulator for the second matmul
    j = pl.program_id(1)

    @pl.when(j == 0)
    def _():
        # LayerNorm over the real `dim` lanes, fused single-pass statistics.
        # Padded lanes of x are zero, so sum / sum-of-squares only see real lanes.
        x = x_ref[...].astype(jnp.float32)
        inv_d = 1.0 / float(d_actual)
        mean = jnp.sum(x, axis=-1, keepdims=True) * inv_d
        ex2 = jnp.sum(x * x, axis=-1, keepdims=True) * inv_d
        var = jnp.maximum(ex2 - mean * mean, 0.0)
        x_hat = (x - mean) * jax.lax.rsqrt(var + EPS)
        # gamma/beta are zero in padded lanes (and padded w1 rows are zero),
        # so padding never pollutes the matmuls.
        x_ln = x_hat * g_ref[...].astype(jnp.float32) + b_ref[...].astype(jnp.float32)
        xln_ref[...] = x_ln.astype(xln_ref.dtype)   # computed once per row tile
        acc_ref[...] = jnp.zeros_like(acc_ref)

    # Linear(dim -> dim*mult) for this hidden tile: MXU fed bf16, f32 accumulation.
    h = jnp.dot(xln_ref[...], w1_ref[...], preferred_element_type=jnp.float32)
    h = h + b1_ref[...].astype(jnp.float32)
    # SiLU with a single EUP op: sigmoid(h) = 0.5 * (1 + tanh(h / 2)).
    h = h * (0.5 * (1.0 + jnp.tanh(0.5 * h)))
    # Dropout(p) -> identity in inference.
    # Linear(dim*mult -> dim): accumulate this hidden tile's contribution in f32.
    acc_ref[...] += jnp.dot(h.astype(w2_ref.dtype), w2_ref[...],
                            preferred_element_type=jnp.float32)

    @pl.when(j == pl.num_programs(1) - 1)
    def _():
        o_ref[...] = (acc_ref[...] + b2_ref[...].astype(jnp.float32)).astype(o_ref.dtype)


def feedforward(x, gamma, beta, w1, b1, w2, b2, *, tm=512, th=512,
                mxu_dtype=jnp.bfloat16):
    """x: (B, S, D). Weights in (in, out) layout (i.e. torch weight.T)."""
    B, S, D = x.shape
    H = w1.shape[1]
    M = B * S

    # MXU input dtype: down-cast f32 weights to bf16 (never up-cast narrow weights).
    w_dtype = jnp.dtype(w1.dtype)
    if mxu_dtype is not None and jnp.dtype(mxu_dtype).itemsize < w_dtype.itemsize:
        w_dtype = jnp.dtype(mxu_dtype)

    # Lane-dense padding. For best MXU utilization pick D/H that are already
    # multiples of 256 (v6e/v7x MXU width); 128 is the hard minimum.
    Dp = _round_up(D, 128)

    # Row tile: big tiles amortize the ~0.35us per-grid-step pipeline overhead.
    TM = min(tm, _round_up(M, 8))
    # Keep at least 2 row tiles when there is enough work so a 2-TensorCore part
    # (v7x) can shard the "parallel" M axis; harmless on v5e/v6e.
    if M > 512:
        TM = min(TM, max(256, _round_up((M + 1) // 2, 256)))
    TM = max(8, (TM // 8) * 8)

    # Hidden tile.
    TH = _round_up(min(th, _round_up(H, 128)), 128)

    # Generation-aware VMEM budget; leave headroom for compiler internal scratch.
    try:
        vmem_cap = int(pltpu.get_tpu_info().vmem_capacity_bytes)
    except Exception:
        vmem_cap = 64 * 1024 * 1024  # conservative fallback, legal on every generation
    budget = int(0.85 * vmem_cap)

    wbytes = jnp.dtype(w_dtype).itemsize
    xbytes = jnp.dtype(x.dtype).itemsize

    def vmem_needed(tm_, th_):
        return (2 * 2 * Dp * th_ * wbytes          # w1 + w2 tiles, double-buffered
                + 2 * 2 * tm_ * Dp * xbytes        # x + out tiles, double-buffered
                + tm_ * Dp * (wbytes + 4)          # x_ln cache + f32 accumulator
                + tm_ * th_ * (4 + wbytes)         # f32 h + its MXU-dtype cast
                + tm_ * Dp * 4                     # f32 upcast of the x tile
                + 4 * (3 * Dp + th_) * 4)          # gamma / beta / b1 / b2 (generous)

    # Shrink tiles instead of silently capping the limit below the requirement.
    while vmem_needed(TM, TH) > budget:
        if TH > 128 and TH >= TM:
            TH = max(128, ((TH // 2) // 128) * 128)
        elif TM > 64:
            TM = max(64, ((TM // 2) // 8) * 8)
        else:
            break
    if vmem_needed(TM, TH) > budget:
        raise ValueError("FeedForward tiles do not fit the VMEM budget; reduce dim/mult.")

    Mp = _round_up(M, TM)
    Hp = _round_up(H, TH)
    grid_m = Mp // TM
    grid_h = Hp // TH
    vmem_limit = int(min(budget, max(2 * vmem_needed(TM, TH), 16 * 1024 * 1024)))

    x2 = _pad_to(x.reshape(M, D), (Mp, Dp))
    g2 = _pad_to(gamma.reshape(1, D), (1, Dp))
    be2 = _pad_to(beta.reshape(1, D), (1, Dp))
    w1p = _pad_to(w1.astype(w_dtype), (Dp, Hp))
    b1p = _pad_to(b1.reshape(1, H), (1, Hp))
    w2p = _pad_to(w2.astype(w_dtype), (Hp, Dp))
    b2p = _pad_to(b2.reshape(1, D), (1, Dp))

    cost = pl.CostEstimate(
        flops=4 * Mp * Dp * Hp + 10 * Mp * Dp + 6 * Mp * Hp,   # 2 matmuls + LN/SiLU VPU work
        transcendentals=Mp * Hp + Mp,                          # tanh + rsqrt
        bytes_accessed=(2 * Mp * Dp * xbytes
                        + grid_m * 2 * Dp * Hp * wbytes
                        + (3 * Dp + Hp) * 4),
    )

    kernel = functools.partial(feedforward_kernel, d_actual=D)

    out = pl.pallas_call(
        kernel,
        out_shape=jax.ShapeDtypeStruct((Mp, Dp), x.dtype),
        grid_spec=pltpu.PrefetchScalarGridSpec(
            num_scalar_prefetch=0,
            grid=(grid_m, grid_h),
            in_specs=[
                pl.BlockSpec((TM, Dp), lambda i, j: (i, 0)),   # x tile (reused across j)
                pl.BlockSpec((1, Dp), lambda i, j: (0, 0)),    # gamma
                pl.BlockSpec((1, Dp), lambda i, j: (0, 0)),    # beta
                pl.BlockSpec((Dp, TH), lambda i, j: (0, j)),   # w1 column tile
                pl.BlockSpec((1, TH), lambda i, j: (0, j)),    # b1 tile
                pl.BlockSpec((TH, Dp), lambda i, j: (j, 0)),   # w2 row tile
                pl.BlockSpec((1, Dp), lambda i, j: (0, 0)),    # b2
            ],
            out_specs=pl.BlockSpec((TM, Dp), lambda i, j: (i, 0)),
            scratch_shapes=[
                pltpu.VMEM((TM, Dp), w_dtype),      # cached x_ln in MXU dtype
                pltpu.VMEM((TM, Dp), jnp.float32),  # f32 output accumulator
            ],
        ),
        compiler_params=pltpu.CompilerParams(
            dimension_semantics=("parallel", "arbitrary"),
            vmem_limit_bytes=vmem_limit,
        ),
        cost_estimate=cost,
    )(x2, g2, be2, w1p, b1p, w2p, b2p)

    return out[:M, :D].reshape(B, S, D)


def reference(x, gamma, beta, w1, b1, w2, b2, mxu_dtype=jnp.bfloat16):
    # Mirrors the kernel's numerics: f32 LayerNorm/SiLU, bf16 MXU inputs, f32 accumulation.
    mean = jnp.mean(x, axis=-1, keepdims=True)
    var = jnp.mean((x - mean) ** 2, axis=-1, keepdims=True)
    x_ln = (x - mean) / jnp.sqrt(var + EPS) * gamma + beta
    h = jnp.dot(x_ln.astype(mxu_dtype), w1.astype(mxu_dtype),
                preferred_element_type=jnp.float32) + b1
    h = h * jax.nn.sigmoid(h)
    return jnp.dot(h.astype(mxu_dtype), w2.astype(mxu_dtype),
                   preferred_element_type=jnp.float32) + b2


if __name__ == "__main__":
    # Module hyperparameters
    dim, mult, dropout = 32, 4, 0.1
    hidden = dim * mult
    B, S = 2, 8

    key = jax.random.PRNGKey(0)
    kx, kw1, kb1, kw2, kb2 = jax.random.split(key, 5)

    x = jax.random.normal(kx, (B, S, dim), dtype=jnp.float32)

    # LayerNorm params (torch defaults: weight=1, bias=0)
    gamma = jnp.ones((dim,), jnp.float32)
    beta = jnp.zeros((dim,), jnp.float32)

    # Linear params, stored as (in, out) = torch weight.T
    lim1 = 1.0 / jnp.sqrt(dim)
    w1 = jax.random.uniform(kw1, (dim, hidden), jnp.float32, -lim1, lim1)
    b1 = jax.random.uniform(kb1, (hidden,), jnp.float32, -lim1, lim1)
    lim2 = 1.0 / jnp.sqrt(hidden)
    w2 = jax.random.uniform(kw2, (hidden, dim), jnp.float32, -lim2, lim2)
    b2 = jax.random.uniform(kb2, (dim,), jnp.float32, -lim2, lim2)

    out = feedforward(x, gamma, beta, w1, b1, w2, b2)
    out = jax.block_until_ready(out)

    ref = reference(x, gamma, beta, w1, b1, w2, b2)
    assert out.shape == (B, S, dim)
    assert jnp.allclose(out, ref, atol=2e-2, rtol=2e-2), "mismatch vs reference"

    print("KERNEL_OK")
</pallas_src>

<mosaic_0001>
module attributes {stable_mosaic.version = 11 : i64} {
  func.func @feedforward_kernel(%arg0: i32, %arg1: i32, %arg2: memref<16x128xf32, #tpu.memory_space<vmem>>, %arg3: memref<1x128xf32, #tpu.memory_space<vmem>>, %arg4: memref<1x128xf32, #tpu.memory_space<vmem>>, %arg5: memref<128x128xbf16, #tpu.memory_space<vmem>>, %arg6: memref<1x128xf32, #tpu.memory_space<vmem>>, %arg7: memref<128x128xbf16, #tpu.memory_space<vmem>>, %arg8: memref<1x128xf32, #tpu.memory_space<vmem>>, %arg9: memref<16x128xf32, #tpu.memory_space<vmem>>, %arg10: memref<16x128xbf16, #tpu.memory_space<vmem>>, %arg11: memref<16x128xf32, #tpu.memory_space<vmem>>) attributes {dimension_semantics = [#tpu.dimension_semantics<parallel>, #tpu.dimension_semantics<arbitrary>], iteration_bounds = array<i64: 1, 1>, scalar_prefetch = 0 : i64, scratch_operands = 2 : i64, tpu.core_type = #tpu.core_type<tc>, window_params = [{transform_indices = @transform_0, window_bounds = array<i64: 16, 128>}, {pipeline_mode = #tpu.pipeline_mode<synchronous>, transform_indices = @transform_1, window_bounds = array<i64: 1, 128>}, {pipeline_mode = #tpu.pipeline_mode<synchronous>, transform_indices = @transform_2, window_bounds = array<i64: 1, 128>}, {transform_indices = @transform_3, window_bounds = array<i64: 128, 128>}, {transform_indices = @transform_4, window_bounds = array<i64: 1, 128>}, {transform_indices = @transform_5, window_bounds = array<i64: 128, 128>}, {pipeline_mode = #tpu.pipeline_mode<synchronous>, transform_indices = @transform_6, window_bounds = array<i64: 1, 128>}, {transform_indices = @transform_7, window_bounds = array<i64: 16, 128>}]} {
    %c0_i32 = arith.constant 0 : i32
    %0 = arith.cmpi eq, %arg1, %c0_i32 : i32
    %1 = arith.extui %0 : i1 to i32
    %c0_i32_0 = arith.constant 0 : i32
    %2 = arith.cmpi ne, %1, %c0_i32_0 : i32
    scf.if %2 {
      %c0_18 = arith.constant 0 : index
      %c0_19 = arith.constant 0 : index
      %26 = vector.load %arg2[%c0_18, %c0_19] : memref<16x128xf32, #tpu.memory_space<vmem>>, vector<16x128xf32>
      %cst_20 = arith.constant dense<0.000000e+00> : vector<16xf32>
      %27 = vector.multi_reduction <add>, %26, %cst_20 [1] : vector<16x128xf32> to vector<16xf32>
      %28 = vector.shape_cast %27 : vector<16xf32> to vector<16x1xf32>
      %cst_21 = arith.constant 3.125000e-02 : f32
      %29 = vector.broadcast %cst_21 : f32 to vector<16x1xf32>
      %30 = arith.mulf %28, %29 : vector<16x1xf32>
      %31 = arith.mulf %26, %26 : vector<16x128xf32>
      %cst_22 = arith.constant dense<0.000000e+00> : vector<16xf32>
      %32 = vector.multi_reduction <add>, %31, %cst_22 [1] : vector<16x128xf32> to vector<16xf32>
      %33 = vector.shape_cast %32 : vector<16xf32> to vector<16x1xf32>
      %cst_23 = arith.constant 3.125000e-02 : f32
      %34 = vector.broadcast %cst_23 : f32 to vector<16x1xf32>
      %35 = arith.mulf %33, %34 : vector<16x1xf32>
      %36 = arith.mulf %30, %30 : vector<16x1xf32>
      %37 = arith.subf %35, %36 : vector<16x1xf32>
      %cst_24 = arith.constant 0.000000e+00 : f32
      %38 = vector.broadcast %cst_24 : f32 to vector<16x1xf32>
      %39 = arith.maximumf %37, %38 : vector<16x1xf32>
      %40 = vector.broadcast %30 : vector<16x1xf32> to vector<16x128xf32>
      %41 = arith.subf %26, %40 : vector<16x128xf32>
      %cst_25 = arith.constant 9.99999974E-6 : f32
      %42 = vector.broadcast %cst_25 : f32 to vector<16x1xf32>
      %43 = arith.addf %39, %42 : vector<16x1xf32>
      %44 = math.rsqrt %43 : vector<16x1xf32>
      %45 = vector.broadcast %44 : vector<16x1xf32> to vector<16x128xf32>
      %46 = arith.mulf %41, %45 : vector<16x128xf32>
      %c0_26 = arith.constant 0 : index
      %c0_27 = arith.constant 0 : index
      %47 = vector.load %arg3[%c0_26, %c0_27] : memref<1x128xf32, #tpu.memory_space<vmem>>, vector<1x128xf32>
      %48 = vector.broadcast %47 : vector<1x128xf32> to vector<16x128xf32>
      %49 = arith.mulf %46, %48 : vector<16x128xf32>
      %c0_28 = arith.constant 0 : index
      %c0_29 = arith.constant 0 : index
      %50 = vector.load %arg4[%c0_28, %c0_29] : memref<1x128xf32, #tpu.memory_space<vmem>>, vector<1x128xf32>
      %51 = vector.broadcast %50 : vector<1x128xf32> to vector<16x128xf32>
      %52 = arith.addf %49, %51 : vector<16x128xf32>
      %53 = arith.truncf %52 : vector<16x128xf32> to vector<16x128xbf16>
      %c0_30 = arith.constant 0 : index
      %c0_31 = arith.constant 0 : index
      %54 = vector.load %arg10[%c0_30, %c0_31] : memref<16x128xbf16, #tpu.memory_space<vmem>>, vector<16x128xbf16>
      tpu.vector_store %arg10[%c0_30, %c0_31], %53 {strides = array<i32>} : memref<16x128xbf16, #tpu.memory_space<vmem>>, vector<16x128xbf16>,
      %cst_32 = arith.constant 0.000000e+00 : f32
      %55 = vector.broadcast %cst_32 : f32 to vector<16x128xf32>
      %c0_33 = arith.constant 0 : index
      %c0_34 = arith.constant 0 : index
      %56 = vector.load %arg11[%c0_33, %c0_34] : memref<16x128xf32, #tpu.memory_space<vmem>>, vector<16x128xf32>
      tpu.vector_store %arg11[%c0_33, %c0_34], %55 {strides = array<i32>} : memref<16x128xf32, #tpu.memory_space<vmem>>, vector<16x128xf32>,
    } else {
    }
    %c0 = arith.constant 0 : index
    %c0_1 = arith.constant 0 : index
    %3 = vector.load %arg10[%c0, %c0_1] : memref<16x128xbf16, #tpu.memory_space<vmem>>, vector<16x128xbf16>
    %c0_2 = arith.constant 0 : index
    %c0_3 = arith.constant 0 : index
    %4 = vector.load %arg5[%c0_2, %c0_3] : memref<128x128xbf16, #tpu.memory_space<vmem>>, vector<128x128xbf16>
    %cst = arith.constant dense<0.000000e+00> : vector<16x128xf32>
    %5 = tpu.matmul %3, %4, %cst {dimension_numbers = #tpu.dot_dimension_numbers<[1], [0], [0], [1], [0, 0, 1, 1], [], []>} : vector<16x128xbf16>, vector<128x128xbf16>, vector<16x128xf32> -> vector<16x128xf32>
    %c0_4 = arith.constant 0 : index
    %c0_5 = arith.constant 0 : index
    %6 = vector.load %arg6[%c0_4, %c0_5] : memref<1x128xf32, #tpu.memory_space<vmem>>, vector<1x128xf32>
    %7 = vector.broadcast %6 : vector<1x128xf32> to vector<16x128xf32>
    %8 = arith.addf %5, %7 : vector<16x128xf32>
    %cst_6 = arith.constant 5.000000e-01 : f32
    %9 = vector.broadcast %cst_6 : f32 to vector<16x128xf32>
    %10 = arith.mulf %9, %8 : vector<16x128xf32>
    %11 = math.tanh %10 : vector<16x128xf32>
    %cst_7 = arith.constant 1.000000e+00 : f32
    %12 = vector.broadcast %cst_7 : f32 to vector<16x128xf32>
    %13 = arith.addf %12, %11 : vector<16x128xf32>
    %cst_8 = arith.constant 5.000000e-01 : f32
    %14 = vector.broadcast %cst_8 : f32 to vector<16x128xf32>
    %15 = arith.mulf %14, %13 : vector<16x128xf32>
    %16 = arith.mulf %8, %15 : vector<16x128xf32>
    %c0_9 = arith.constant 0 : index
    %c0_10 = arith.constant 0 : index
    %17 = vector.load %arg11[%c0_9, %c0_10] : memref<16x128xf32, #tpu.memory_space<vmem>>, vector<16x128xf32>
    %18 = arith.truncf %16 : vector<16x128xf32> to vector<16x128xbf16>
    %c0_11 = arith.constant 0 : index
    %c0_12 = arith.constant 0 : index
    %19 = vector.load %arg7[%c0_11, %c0_12] : memref<128x128xbf16, #tpu.memory_space<vmem>>, vector<128x128xbf16>
    %cst_13 = arith.constant dense<0.000000e+00> : vector<16x128xf32>
    %20 = tpu.matmul %18, %19, %cst_13 {dimension_numbers = #tpu.dot_dimension_numbers<[1], [0], [0], [1], [0, 0, 1, 1], [], []>} : vector<16x128xbf16>, vector<128x128xbf16>, vector<16x128xf32> -> vector<16x128xf32>
    %21 = arith.addf %17, %20 : vector<16x128xf32>
    %c0_14 = arith.constant 0 : index
    %c0_15 = arith.constant 0 : index
    %22 = vector.load %arg11[%c0_14, %c0_15] : memref<16x128xf32, #tpu.memory_space<vmem>>, vector<16x128xf32>
    tpu.vector_store %arg11[%c0_14, %c0_15], %21 {strides = array<i32>} : memref<16x128xf32, #tpu.memory_space<vmem>>, vector<16x128xf32>,
    %c0_i32_16 = arith.constant 0 : i32
    %23 = arith.cmpi eq, %arg1, %c0_i32_16 : i32
    %24 = arith.extui %23 : i1 to i32
    %c0_i32_17 = arith.constant 0 : i32
    %25 = arith.cmpi ne, %24, %c0_i32_17 : i32
    scf.if %25 {
      %c0_18 = arith.constant 0 : index
      %c0_19 = arith.constant 0 : index
      %26 = vector.load %arg11[%c0_18, %c0_19] : memref<16x128xf32, #tpu.memory_space<vmem>>, vector<16x128xf32>
      %c0_20 = arith.constant 0 : index
      %c0_21 = arith.constant 0 : index
      %27 = vector.load %arg8[%c0_20, %c0_21] : memref<1x128xf32, #tpu.memory_space<vmem>>, vector<1x128xf32>
      %28 = vector.broadcast %27 : vector<1x128xf32> to vector<16x128xf32>
      %29 = arith.addf %26, %28 : vector<16x128xf32>
      %c0_22 = arith.constant 0 : index
      %c0_23 = arith.constant 0 : index
      %30 = vector.load %arg9[%c0_22, %c0_23] : memref<16x128xf32, #tpu.memory_space<vmem>>, vector<16x128xf32>
      tpu.vector_store %arg9[%c0_22, %c0_23], %29 {strides = array<i32>} : memref<16x128xf32, #tpu.memory_space<vmem>>, vector<16x128xf32>,
    } else {
    }
    return
  }
  func.func @transform_0(%arg0: i32, %arg1: i32) -> (i32, i32) {
    %c0_i32 = arith.constant 0 : i32
    %c0_i32_0 = arith.constant 0 : i32
    return %arg0, %c0_i32 : i32, i32
  }
  func.func @transform_1(%arg0: i32, %arg1: i32) -> (i32, i32) {
    %c0_i32 = arith.constant 0 : i32
    %c0_i32_0 = arith.constant 0 : i32
    %c0_i32_1 = arith.constant 0 : i32
    return %c0_i32, %c0_i32_0 : i32, i32
  }
  func.func @transform_2(%arg0: i32, %arg1: i32) -> (i32, i32) {
    %c0_i32 = arith.constant 0 : i32
    %c0_i32_0 = arith.constant 0 : i32
    %c0_i32_1 = arith.constant 0 : i32
    return %c0_i32, %c0_i32_0 : i32, i32
  }
  func.func @transform_3(%arg0: i32, %arg1: i32) -> (i32, i32) {
    %c0_i32 = arith.constant 0 : i32
    %c0_i32_0 = arith.constant 0 : i32
    return %c0_i32, %arg1 : i32, i32
  }
  func.func @transform_4(%arg0: i32, %arg1: i32) -> (i32, i32) {
    %c0_i32 = arith.constant 0 : i32
    %c0_i32_0 = arith.constant 0 : i32
    return %c0_i32, %arg1 : i32, i32
  }
  func.func @transform_5(%arg0: i32, %arg1: i32) -> (i32, i32) {
    %c0_i32 = arith.constant 0 : i32
    %c0_i32_0 = arith.constant 0 : i32
    return %arg1, %c0_i32 : i32, i32
  }
  func.func @transform_6(%arg0: i32, %arg1: i32) -> (i32, i32) {
    %c0_i32 = arith.constant 0 : i32
    %c0_i32_0 = arith.constant 0 : i32
    %c0_i32_1 = arith.constant 0 : i32
    return %c0_i32, %c0_i32_0 : i32, i32
  }
  func.func @transform_7(%arg0: i32, %arg1: i32) -> (i32, i32) {
    %c0_i32 = arith.constant 0 : i32
    %c0_i32_0 = arith.constant 0 : i32
    return %arg0, %c0_i32 : i32, i32
  }
}

</mosaic_0001>

<bundles_post_ra>
// kernel: tpu_custom_call.1
= control target key start
LH: loop header
LB: loop body
LE: loop exit
PB: predicated region body
PF: predicated region fallthrough
CT: control target
= control target key end

     0   :  { %12 = vsyncpa [#allocation5], 0  ;;  %s707_s0 = inlined_call_operand.hbm [shape: f32[16,128], index: 0, kind: input, shape index: {}]   ;;  %s708_s1 = inlined_call_operand.hbm [shape: f32[1,128], index: 1, kind: input, shape index: {}]   ;;  %s709_s2 = inlined_call_operand.vmem [shape: f32[1,128], index: 2, kind: input, shape index: {}]   ;;  %s710_s3 = inlined_call_operand.hbm [shape: bf16[128,128], index: 3, kind: input, shape index: {}]   ;;  %s711_s4 = inlined_call_operand.vmem [shape: f32[1,128], index: 4, kind: input, shape index: {}]   ;;  %s712_s5 = inlined_call_operand.hbm [shape: bf16[128,128], index: 5, kind: input, shape index: {}]   ;;  %s713_s6 = inlined_call_operand.vmem [shape: f32[1,128], index: 6, kind: input, shape index: {}]   ;;  %s714_s7 = inlined_call_operand.hbm [shape: f32[16,128], index: 7, kind: output, shape index: {}]  }
   0x1   :  { %13 = vsyncpa [#allocation8], 0 }
   0x2   :  { %14 = vsyncpa [#allocation11], 0  ;;  %s34_s26 = sshll.u32 %s708_s1, 4  ;;  %s35_s26 = int_to_ptr.hbm [resolvable:$true] %s34_s26 }
   0x3   :  { %15 = vsyncpa [#allocation6], 0  ;;  %s616_s27 = smov [#allocation7]   ;;  %s20_s8 = sshll.u32 %s707_s0, 4  ;;  %s21_s8 = int_to_ptr.hbm [resolvable:$true] %s20_s8 }
   0x4   :  { %s36_s28 = sshll.u32 %s616_s27, 4  ;;  %s617_s9 = smov [#allocation4]   ;;  %s37_s28 = int_to_ptr.vmem [resolvable:$true] %s36_s28 }
   0x5   :  { %39 = dma.hbm_to_vmem [thread:$0]  %s35_s26, 16, %s37_s28, [#allocation8]  }
   0x6   :  { %s22_s10 = sshll.u32 %s617_s9, 4  ;;  %s618_s11 = smov 128   ;;  %s23_s10 = int_to_ptr.vmem [resolvable:$true] %s22_s10 }
   0x7   :  { %s619_s12 = smov 8   ;;  %s46_s14 = sshll.u32 %s710_s3, 4  ;;  %s47_s14 = int_to_ptr.hbm [resolvable:$true] %s46_s14 }
   0x8   :  { %28 = dma.hbm_to_vmem [thread:$0]  %s21_s8, 256, %s23_s10, [#allocation5], %s618_s11, %s618_s11, %s619_s12  }
   0x9   :  { %s620_s15 = smov [#allocation9]   ;;  %s61_s18 = sshll.u32 %s712_s5, 4  ;;  %s62_s18 = int_to_ptr.hbm [resolvable:$true] %s61_s18 }
   0xa   :  { %s48_s16 = sshll.u32 %s620_s15, 4  ;;  %s621_s19 = smov 64   ;;  %s49_s16 = int_to_ptr.vmem [resolvable:$true] %s48_s16 }
   0xb   :  { %s622_s20 = smov 4   ;;  %s623_s21 = smov [#allocation10]  }
   0xc   :  { %54 = dma.hbm_to_vmem [thread:$0]  %s47_s14, 1024, %s49_s16, [#allocation8], %s621_s19, %s621_s19, %s622_s20  }
   0xd   :  { %s63_s22 = sshll.u32 %s623_s21, 4  ;;  %s64_s22 = int_to_ptr.vmem [resolvable:$true] %s63_s22 }
   0xe   :  { %69 = dma.hbm_to_vmem [thread:$0]  %s62_s18, 1024, %s64_s22, [#allocation11], %s621_s19, %s621_s19, %s622_s20  }
   0xf   :  { %608 = dma.done.wait [#allocation5], 256  }
  0x10   :  { %609 = vsyncadd [#allocation5], 4294967040 }
  0x11   :  { %610 = dma.done.wait [#allocation8], 1040  }
  0x12   :  { %611 = vsyncadd [#allocation8], 4294966256 }
  0x13   :  { %612 = dma.done.wait [#allocation11], 1024  }
  0x14   :  { %613 = vsyncadd [#allocation11], 4294966272  ;;  %v680_v0 = vld [vmem:[#allocation4] sm:$0xff]  ;;  %v685_v2 = vld [vmem:[#allocation4 + $0x8] sm:$0xff]  ;;  %s624_s25 = smov [#allocation12]   ;;  %s362_s29 = sshll.u32 %s714_s7, 4  ;;  %s363_s29 = int_to_ptr.hbm [resolvable:$true] %s362_s29 }
  0x15   :  { %94 = vadd.xlane.f32.xlu0 %v680_v0  ;;  %v100_v1 = vmul.f32 %v680_v0, %v680_v0  ;;  %v101_v3 = vmul.f32 %v685_v2, %v685_v2  ;;  %v453_v4 = vld [vmem:[#allocation9 + $0x38] sm:$0xff]  ;;  %v452_v5 = vld [vmem:[#allocation9 + $0x30] sm:$0xff]  ;;  %v451_v6 = vld [vmem:[#allocation9 + $0x28] sm:$0xff]  ;;  %s360_s26 = sshll.u32 %s624_s25, 4  ;;  %s361_s26 = int_to_ptr.vmem [resolvable:$true] %s360_s26 }
  0x16   :  { %234 = vmatpush.bf16.msra.mxu0 %v453_v4  ;;  %v450_v10 = vld [vmem:[#allocation9 + $0x20] sm:$0xff]  ;;  %v449_v14 = vld [vmem:[#allocation9 + $0x18] sm:$0xff]  ;;  %v448_v20 = vld [vmem:[#allocation9 + $0x10] sm:$0xff] }
  0x17   :  { %102 = vadd.xlane.f32.xlu1 %v100_v1  ;;  %v447_v24 = vld [vmem:[#allocation9 + $0x8] sm:$0xff]  ;;  %v446_v26 = vld [vmem:[#allocation9] sm:$0xff]  ;;  %v461_v32 = vld [vmem:[#allocation10 + $0x38] sm:$0xff] }
  0x18   :  { %325 = vmatpush.bf16.msra.mxu1 %v461_v32  ;;  %v476_v42 = vld [vmem:[#allocation7] ss:$0 sm:$0xff]  ;;  %v477_v47 = vld [vmem:[%s709_s2] ss:$0 sm:$0xff]  ;;  %v460_v55 = vld [vmem:[#allocation10 + $0x30] sm:$0xff] }
  0x19   :  { %v459_v56 = vld [vmem:[#allocation10 + $0x28] sm:$0xff]  ;;  %v458_v57 = vld [vmem:[#allocation10 + $0x20] sm:$0xff]  ;;  %v457_v58 = vld [vmem:[#allocation10 + $0x18] sm:$0xff] }
  0x1a   :  { %235 = vmatpush.bf16.msra.mxu0 %v452_v5  ;;  %v456_v59 = vld [vmem:[#allocation10 + $0x10] sm:$0xff]  ;;  %v455_v60 = vld [vmem:[#allocation10 + $0x8] sm:$0xff]  ;;  %v454_v61 = vld [vmem:[#allocation10] sm:$0xff] }
  0x1b   :  { %v478_v62 = vld [vmem:[%s711_s4] ss:$0 sm:$0xff] }
  0x1c   :  { %326 = vmatpush.bf16.msra.mxu1 %v460_v55 }
  0x1d   :  { %96 = vadd.xlane.f32.xlu0 %v685_v2 }
  0x1e   :  { %236 = vmatpush.bf16.msra.mxu0 %v451_v6 }
  0x1f   :  { %104 = vadd.xlane.f32.xlu1 %v101_v3 }
  0x20   :  { %327 = vmatpush.bf16.msra.mxu1 %v459_v56 }
  0x22   :  { %237 = vmatpush.bf16.msra.mxu0 %v450_v10 }
  0x24   :  { %328 = vmatpush.bf16.msra.mxu1 %v458_v57 }
  0x26   :  { %238 = vmatpush.bf16.msra.mxu0 %v449_v14  ;;  %v479_v14 = vld [vmem:[%s713_s6] ss:$0 sm:$0xff] }
  0x28   :  { %329 = vmatpush.bf16.msra.mxu1 %v457_v58 }
  0x2a   :  { %239 = vmatpush.bf16.msra.mxu0 %v448_v20 }
  0x2c   :  { %330 = vmatpush.bf16.msra.mxu1 %v456_v59 }
  0x2e   :  { %240 = vmatpush.bf16.msra.mxu0 %v447_v24 }
  0x30   :  { %331 = vmatpush.bf16.msra.mxu1 %v455_v60 }
  0x32   :  { %241 = vmatpush.bf16.msra.mxu0 %v446_v26 }
  0x34   :  { %332 = vmatpush.bf16.msra.mxu1 %v454_v61 }
  0x88   :  { %v95_v7 = vpop.xlane.xlu0 %94 }
  0x89   :  { %v98_v8 = vmul.f32 0.03125, %v95_v7 }
  0x8a   :  { %v103_v9 = vpop.xlane.xlu1 %102 }
  0x8b   :  { %v108_v11 = vmul.f32 %v98_v8, %v98_v8  ;;  %v106_v12 = vmul.f32 0.03125, %v103_v9  ;;  %v114_v40 = vsub.f32 %v680_v0, %v98_v8 }
  0x8d   :  { %v110_v13 = vsub.f32 %v106_v12, %v108_v11 }
  0x8f   :  { %v112_v15 = vmax.f32 %v110_v13, 0.0 }
  0x90   :  { %v97_v16 = vpop.xlane.xlu0 %96 }
  0x91   :  { %v116_v17 = vadd.f32 1e-05, %v112_v15  ;;  %v99_v18 = vmul.f32 0.03125, %v97_v16 }
  0x92   :  { %v105_v19 = vpop.xlane.xlu1 %104 }
  0x93   :  { %480 = vrsqrt.f32 %v116_v17  ;;  %v109_v21 = vmul.f32 %v99_v18, %v99_v18  ;;  %v107_v22 = vmul.f32 0.03125, %v105_v19  ;;  %vm124_vm1 = vweird.f32 %v116_v17 }
  0x94   :  { %v115_v45 = vsub.f32 %v685_v2, %v99_v18 }
  0x95   :  { %v111_v23 = vsub.f32 %v107_v22, %v109_v21 }
  0x97   :  { %v113_v25 = vmax.f32 %v111_v23, 0.0 }
  0x99   :  { %v481_v27 = vpop.eup %480  ;;  %v117_v29 = vadd.f32 1e-05, %v113_v25 }
  0x9a   :  { %v119_v28 = vmul.f32 %v481_v27, %v116_v17  ;;  %vm125_vm0 = vweird.f32 %v481_v27 }
  0x9b   :  { %482 = vrsqrt.f32 %v117_v29  ;;  %vm126_vm2 = vmor %vm124_vm1, %vm125_vm0  ;;  %vm134_vm4 = vweird.f32 %v117_v29 }
  0x9c   :  { %v120_v30 = vmul.f32 %v481_v27, %v119_v28 }
  0x9e   :  { %v121_v31 = vmul.f32 0.5, %v120_v30 }
  0xa0   :  { %v122_v33 = vsub.f32 1.5, %v121_v31 }
  0xa1   :  { %v483_v34 = vpop.eup %482 }
  0xa2   :  { %v123_v35 = vmul.f32 %v481_v27, %v122_v33  ;;  %v129_v36 = vmul.f32 %v483_v34, %v117_v29  ;;  %vm135_vm3 = vweird.f32 %v483_v34 }
  0xa3   :  { %vm136_vm5 = vmor %vm134_vm4, %vm135_vm3 }
  0xa4   :  { %v130_v37 = vmul.f32 %v483_v34, %v129_v36  ;;  %v127_v38 = vsel %vm126_vm2, %v481_v27, %v123_v35 }
  0xa5   :  { %v138_v43 = vmul.f32 %v127_v38, %v114_v40 }
  0xa6   :  { %v131_v39 = vmul.f32 0.5, %v130_v37 }
  0xa7   :  { %v144_v48 = vmul.f32 %v476_v42, %v138_v43 }
  0xa8   :  { %v132_v41 = vsub.f32 1.5, %v131_v39 }
  0xa9   :  { %v150_v51 = vadd.f32 %v477_v47, %v144_v48 }
  0xaa   :  { %v133_v44 = vmul.f32 %v483_v34, %v132_v41 }
  0xac   :  { %v137_v46 = vsel %vm136_vm5, %v483_v34, %v133_v44 }
  0xad   :  { %v139_v49 = vmul.f32 %v137_v46, %v115_v45 }
  0xaf   :  { %v145_v50 = vmul.f32 %v476_v42, %v139_v49 }
  0xb1   :  { %v151_v52 = vadd.f32 %v477_v47, %v145_v50 }
  0xb3   :  { %v465_v53 = vpack.c.bf16 %v151_v52, %v150_v51 }
  0xb5   :  { %466 = vst [vmem:[#allocation2] sm:$0xff] %v465_v53  }
  0xbc   :  { %v445_v54 = vld [vmem:[#allocation2] sm:$0xff] }
  0xbd   :  { %242 = vmatmul.bf16.vlgmr.msra.gmra.mxu0 %v445_v54 }
 0x13a   :  { %v243_v63 = vpop.f32.mrf.mxu0 }
 0x13b   :  { %v244_v0 = vadd.f32 %v478_v62, %v243_v63 }
 0x13d   :  { %v248_v1 = vmul.f32 0.5, %v244_v0 }
 0x13f   :  { %484 = vtanh.f32 %v248_v1 }
 0x142   :  { %v245_v2 = vpop.f32.mrf.mxu0 }
 0x143   :  { %v246_v3 = vadd.f32 %v478_v62, %v245_v2 }
 0x145   :  { %v249_v4 = vmul.f32 0.5, %v246_v3  ;;  %v485_v5 = vpop.eup %484 }
 0x146   :  { %v252_v6 = vadd.f32 1.0, %v485_v5 }
 0x147   :  { %486 = vtanh.f32 %v249_v4 }
 0x148   :  { %v254_v8 = vmul.f32 0.5, %v252_v6 }
 0x14a   :  { %v256_v11 = vmul.f32 %v254_v8, %v244_v0 }
 0x14d   :  { %v487_v7 = vpop.eup %486 }
 0x14e   :  { %v253_v9 = vadd.f32 1.0, %v487_v7 }
 0x150   :  { %v255_v10 = vmul.f32 0.5, %v253_v9 }
 0x152   :  { %v257_v12 = vmul.f32 %v255_v10, %v246_v3 }
 0x154   :  { %v260_v13 = vpack.c.bf16 %v257_v12, %v256_v11 }
 0x156   :  { %333 = vmatmul.bf16.vlgmr.msra.gmra.mxu1 %v260_v13 }
 0x1d3   :  { %v334_v15 = vpop.f32.mrf.mxu1 }
 0x1d4   :  { %v352_v16 = vadd.f32 %v479_v14, %v334_v15 }
 0x1d6   :  { %354 = vst [vmem:[#allocation12] sm:$0xff] %v352_v16 }
 0x1db   :  { %v336_v17 = vpop.f32.mrf.mxu1 }
 0x1dc   :  { %v353_v18 = vadd.f32 %v479_v14, %v336_v17 }
 0x1de   :  { %355 = vst [vmem:[#allocation12 + $0x8] sm:$0xff] %v353_v18 }
 0x1df   :  { %368 = dma.vmem_to_hbm [thread:$0]  %s361_s26, 256, %s363_s29, [#allocation6], %s618_s11, %s618_s11, %s619_s12  }
 0x1e0   :  { %614 = dma.done.wait [#allocation6], 256  }
 0x1e1   :  { %615 = vsyncadd [#allocation6], 4294967040 }
 0x1e2   :  { %373 = vsyncpa [#allocation5], 1 }
 0x1e3   :  { %374 = vsyncpa [#allocation8], 1 }
 0x1e4   :  { %375 = vsyncpa [#allocation11], 1 }
 0x1e5   :  { %376 = vsyncpa [#allocation6], 1 }

</bundles_post_ra>
